<compile_context>
chip_gen: v7x
topology: tpu7x:2x2x1
jax: 0.10.0
libtpu: 0.0.40
codegen_flags: <defaults>
</compile_context>

<pallas_src>
import functools

import jax
import jax.numpy as jnp
from jax import lax
from jax.experimental import pallas as pl
from jax.experimental.pallas import tpu as pltpu


def _attn_kernel(x_ref, wq_ref, bq_ref, wk_ref, bk_ref, wv_ref, bv_ref,
                 o_ref, k_sc, v_sc, *, tq, s_real):
    """One (batch, query-tile) grid step.

    x_ref  : (Sp, D)  full (padded) sequence for this batch element
    wq_ref : (D, D)   query weight with 1/sqrt(D) pre-folded
    wk/wv  : (D, D)   key / value weights
    b*_ref : (1, D)
    o_ref  : (TQ, D)  output tile
    k_sc   : (Sp, D)  K cache in the matmul dtype, computed once per batch
    v_sc   : (Sp, D)  V cache in the matmul dtype
    """
    q_idx = pl.program_id(1)
    mm_dtype = x_ref.dtype

    # K/V projections once per batch element (query tile 0), cached in VMEM
    # in the matmul dtype.  Relies on the q axis being the inner, "arbitrary"
    # grid axis (b outer / "parallel"), which the grid spec below guarantees.
    @pl.when(q_idx == 0)
    def _():
        x_all = x_ref[...]
        k_sc[...] = (jnp.dot(x_all, wk_ref[...],
                             preferred_element_type=jnp.float32)
                     + bk_ref[...]).astype(k_sc.dtype)
        v_sc[...] = (jnp.dot(x_all, wv_ref[...],
                             preferred_element_type=jnp.float32)
                     + bv_ref[...]).astype(v_sc.dtype)

    # Q rows for this tile are sliced out of the already-resident x block, so
    # x is only read from HBM once per batch element.
    q_start = pl.multiple_of(q_idx * tq, tq)
    xq = x_ref[pl.ds(q_start, tq), :]
    q = (jnp.dot(xq, wq_ref[...], preferred_element_type=jnp.float32)
         + bq_ref[...]).astype(mm_dtype)

    # scores = Q @ K^T, contracting the last dims of both operands (no
    # explicit transposed copy of K).  The softmax scale is already in wq/bq.
    scores = lax.dot_general(q, k_sc[...], (((1,), (1,)), ((), ())),
                             preferred_element_type=jnp.float32)

    s_pad = scores.shape[-1]
    if s_real != s_pad:  # static branch: mask padded key columns
        col = lax.broadcasted_iota(jnp.int32, scores.shape, 1)
        scores = jnp.where(col < s_real, scores, jnp.float32(-1e30))

    # Numerically stable softmax over keys; normalization is applied after
    # the AV matmul (O(TQ*D) multiplies instead of O(TQ*S), and the (TQ,S)
    # normalized-probability temporary never materializes).
    m = jnp.max(scores, axis=-1, keepdims=True)
    p = jnp.exp(scores - m)
    denom = jnp.sum(p, axis=-1, keepdims=True)

    out = jnp.dot(p.astype(mm_dtype), v_sc[...],
                  preferred_element_type=jnp.float32)
    out = out * pl.reciprocal(denom, approx=True)
    o_ref[...] = out.astype(o_ref.dtype)


def _round_up(n, m):
    return ((n + m - 1) // m) * m


def _vmem_capacity_bytes():
    try:
        return int(pltpu.get_tpu_info().vmem_capacity_bytes)
    except Exception:
        return 64 * 1024 * 1024  # conservative fallback: v7x per-core VMEM


def _vmem_footprint(tq, s_p, d, itemsize):
    kv = 2 * s_p * d * itemsize                 # K + V caches (single copy)
    xb = 2 * s_p * d * itemsize                 # x block (default 2 buffers)
    wb = 2 * (3 * d * d + 3 * d) * itemsize     # weights/biases (2 buffers)
    ob = 2 * tq * d * itemsize + tq * d * 4     # out tile + Q temp
    sc = 2 * tq * s_p * 4                       # scores + p f32 temporaries
    return kv + xb + wb + ob + sc


def _pick_tile(s, d, itemsize, vmem_cap):
    """Return (tq, s_padded): tq a multiple of 8, s_padded a multiple of tq."""
    if s <= 256:
        t = _round_up(s, 8)
        return t, t
    budget = int(vmem_cap * 0.7)
    best = None
    for t in (512, 256, 128):
        s_p = _round_up(s, t)
        if _vmem_footprint(t, s_p, d, itemsize) > budget:
            continue
        # Prefer the smallest padded length (least wasted work), then the
        # largest tile (better MXU occupancy, fewer per-step overheads).
        key = (s_p, -t)
        if best is None or key < best[0]:
            best = (key, t, s_p)
    if best is None:
        t = 128
        return t, _round_up(s, t)
    return best[1], best[2]


def visual_self_attention(x, wq, bq, wk, bk, wv, bv):
    """x: (B, S, D); w*: (D, D) stored (in, out) so the op is x @ W; b*: (D,)."""
    B, S, D = x.shape
    dtype = x.dtype
    itemsize = jnp.dtype(dtype).itemsize

    # ---- parameter packing (outside the kernel, once per call) ------------
    scale = 1.0 / (D ** 0.5)              # fold softmax scale into Q proj
    wq_s = (wq * scale).astype(dtype)
    bq_s = (bq * scale).astype(dtype).reshape(1, D)
    wk_c = wk.astype(dtype)
    bk_c = bk.astype(dtype).reshape(1, D)
    wv_c = wv.astype(dtype)
    bv_c = bv.astype(dtype).reshape(1, D)

    vmem_cap = _vmem_capacity_bytes()
    tq, s_p = _pick_tile(S, D, itemsize, vmem_cap)
    pad_s = s_p - S
    x_p = jnp.pad(x, ((0, 0), (0, pad_s), (0, 0))) if pad_s else x
    n_q = s_p // tq

    kernel = functools.partial(_attn_kernel, tq=tq, s_real=S)

    footprint = _vmem_footprint(tq, s_p, D, itemsize)
    vmem_limit = int(min(vmem_cap, max(32 << 20, 2 * footprint)))

    cost = pl.CostEstimate(
        flops=int(6 * B * s_p * D * D + 4 * B * s_p * s_p * D),
        transcendentals=int(B * s_p * s_p),
        bytes_accessed=int(itemsize * (2 * B * s_p * D + 3 * D * D + 3 * D)),
    )

    out = pl.pallas_call(
        kernel,
        out_shape=jax.ShapeDtypeStruct((B, s_p, D), dtype),
        grid_spec=pltpu.PrefetchScalarGridSpec(
            num_scalar_prefetch=0,
            grid=(B, n_q),
            in_specs=[
                pl.BlockSpec((pl.Squeezed(), s_p, D), lambda b, q: (b, 0, 0)),  # x
                pl.BlockSpec((D, D), lambda b, q: (0, 0)),   # wq (scaled)
                pl.BlockSpec((1, D), lambda b, q: (0, 0)),   # bq (scaled)
                pl.BlockSpec((D, D), lambda b, q: (0, 0)),   # wk
                pl.BlockSpec((1, D), lambda b, q: (0, 0)),   # bk
                pl.BlockSpec((D, D), lambda b, q: (0, 0)),   # wv
                pl.BlockSpec((1, D), lambda b, q: (0, 0)),   # bv
            ],
            out_specs=pl.BlockSpec((pl.Squeezed(), tq, D),
                                   lambda b, q: (b, q, 0)),
            scratch_shapes=[
                pltpu.VMEM((s_p, D), dtype),   # K cache (matmul dtype)
                pltpu.VMEM((s_p, D), dtype),   # V cache (matmul dtype)
            ],
        ),
        compiler_params=pltpu.CompilerParams(
            dimension_semantics=("parallel", "arbitrary"),
            vmem_limit_bytes=vmem_limit,
        ),
        cost_estimate=cost,
    )(x_p, wq_s, bq_s, wk_c, bk_c, wv_c, bv_c)

    return out[:, :S, :] if pad_s else out


def _reference(x, wq, bq, wk, bk, wv, bv):
    D = x.shape[-1]
    q = x @ wq + bq
    k = x @ wk + bk
    v = x @ wv + bv
    scores = jnp.einsum("bsd,btd->bst", q, k) / (D ** 0.5)
    attn = jax.nn.softmax(scores, axis=-1)
    return jnp.einsum("bst,btd->bsd", attn, v)


if __name__ == "__main__":
    def run_case(key, B, S, D, tol):
        kx, k1, k2, k3, k4, k5, k6 = jax.random.split(key, 7)
        x = jax.random.normal(kx, (B, S, D), dtype=jnp.float32)
        bound = 1.0 / (D ** 0.5)
        wq = jax.random.uniform(k1, (D, D), jnp.float32, -bound, bound)
        wk = jax.random.uniform(k2, (D, D), jnp.float32, -bound, bound)
        wv = jax.random.uniform(k3, (D, D), jnp.float32, -bound, bound)
        bq = jax.random.uniform(k4, (D,), jnp.float32, -bound, bound)
        bk = jax.random.uniform(k5, (D,), jnp.float32, -bound, bound)
        bv = jax.random.uniform(k6, (D,), jnp.float32, -bound, bound)

        out = visual_self_attention(x, wq, bq, wk, bk, wv, bv)
        out = jax.block_until_ready(out)
        ref = _reference(x, wq, bq, wk, bk, wv, bv)
        assert out.shape == (B, S, D)
        # approx=True softmax reciprocal -> slightly looser tolerance.
        assert jnp.allclose(out, ref, atol=tol, rtol=tol), \
            f"mismatch vs reference (B={B}, S={S}, D={D})"

    key = jax.random.PRNGKey(0)
    k0, k1, k2 = jax.random.split(key, 3)
    run_case(k0, 2, 8, 32, 2e-3)     # primary small shape
    run_case(k1, 1, 13, 32, 2e-3)    # non-aligned S -> padded + masked keys
    run_case(k2, 1, 384, 32, 2e-3)   # multi query-tile + per-batch K/V reuse

    print("KERNEL_OK")
</pallas_src>

<mosaic_0001>
module attributes {stable_mosaic.version = 11 : i64} {
  func.func @_attn_kernel(%arg0: i32, %arg1: i32, %arg2: memref<1x8x32xf32, #tpu.memory_space<vmem>>, %arg3: memref<32x32xf32, #tpu.memory_space<vmem>>, %arg4: memref<1x32xf32, #tpu.memory_space<vmem>>, %arg5: memref<32x32xf32, #tpu.memory_space<vmem>>, %arg6: memref<1x32xf32, #tpu.memory_space<vmem>>, %arg7: memref<32x32xf32, #tpu.memory_space<vmem>>, %arg8: memref<1x32xf32, #tpu.memory_space<vmem>>, %arg9: memref<1x8x32xf32, #tpu.memory_space<vmem>>, %arg10: memref<8x32xf32, #tpu.memory_space<vmem>>, %arg11: memref<8x32xf32, #tpu.memory_space<vmem>>) attributes {dimension_semantics = [#tpu.dimension_semantics<parallel>, #tpu.dimension_semantics<arbitrary>], iteration_bounds = array<i64: 2, 1>, scalar_prefetch = 0 : i64, scratch_operands = 2 : i64, tpu.core_type = #tpu.core_type<tc>, window_params = [{transform_indices = @transform_0, window_bounds = array<i64: 1, 8, 32>}, {pipeline_mode = #tpu.pipeline_mode<synchronous>, transform_indices = @transform_1, window_bounds = array<i64: 32, 32>}, {pipeline_mode = #tpu.pipeline_mode<synchronous>, transform_indices = @transform_2, window_bounds = array<i64: 1, 32>}, {pipeline_mode = #tpu.pipeline_mode<synchronous>, transform_indices = @transform_3, window_bounds = array<i64: 32, 32>}, {pipeline_mode = #tpu.pipeline_mode<synchronous>, transform_indices = @transform_4, window_bounds = array<i64: 1, 32>}, {pipeline_mode = #tpu.pipeline_mode<synchronous>, transform_indices = @transform_5, window_bounds = array<i64: 32, 32>}, {pipeline_mode = #tpu.pipeline_mode<synchronous>, transform_indices = @transform_6, window_bounds = array<i64: 1, 32>}, {transform_indices = @transform_7, window_bounds = array<i64: 1, 8, 32>}]} {
    %c0_i32 = arith.constant 0 : i32
    %0 = arith.cmpi eq, %arg1, %c0_i32 : i32
    %1 = arith.extui %0 : i1 to i32
    %c0_i32_0 = arith.constant 0 : i32
    %2 = arith.cmpi ne, %1, %c0_i32_0 : i32
    scf.if %2 {
      %c0_17 = arith.constant 0 : index
      %c0_18 = arith.constant 0 : index
      %c0_19 = arith.constant 0 : index
      %30 = vector.load %arg2[%c0_17, %c0_18, %c0_19] : memref<1x8x32xf32, #tpu.memory_space<vmem>>, vector<1x8x32xf32>
      %31 = vector.shape_cast %30 : vector<1x8x32xf32> to vector<8x32xf32>
      %c0_20 = arith.constant 0 : index
      %c0_21 = arith.constant 0 : index
      %32 = vector.load %arg5[%c0_20, %c0_21] : memref<32x32xf32, #tpu.memory_space<vmem>>, vector<32x32xf32>
      %cst_22 = arith.constant dense<0.000000e+00> : vector<8x32xf32>
      %33 = tpu.matmul %31, %32, %cst_22 {dimension_numbers = #tpu.dot_dimension_numbers<[1], [0], [0], [1], [0, 0, 1, 1], [], []>} : vector<8x32xf32>, vector<32x32xf32>, vector<8x32xf32> -> vector<8x32xf32>
      %c0_23 = arith.constant 0 : index
      %c0_24 = arith.constant 0 : index
      %34 = vector.load %arg6[%c0_23, %c0_24] : memref<1x32xf32, #tpu.memory_space<vmem>>, vector<1x32xf32>
      %35 = vector.broadcast %34 : vector<1x32xf32> to vector<8x32xf32>
      %36 = arith.addf %33, %35 : vector<8x32xf32>
      %c0_25 = arith.constant 0 : index
      %c0_26 = arith.constant 0 : index
      %37 = vector.load %arg10[%c0_25, %c0_26] : memref<8x32xf32, #tpu.memory_space<vmem>>, vector<8x32xf32>
      tpu.vector_store %arg10[%c0_25, %c0_26], %36 {strides = array<i32>} : memref<8x32xf32, #tpu.memory_space<vmem>>, vector<8x32xf32>,
      %c0_27 = arith.constant 0 : index
      %c0_28 = arith.constant 0 : index
      %38 = vector.load %arg7[%c0_27, %c0_28] : memref<32x32xf32, #tpu.memory_space<vmem>>, vector<32x32xf32>
      %cst_29 = arith.constant dense<0.000000e+00> : vector<8x32xf32>
      %39 = tpu.matmul %31, %38, %cst_29 {dimension_numbers = #tpu.dot_dimension_numbers<[1], [0], [0], [1], [0, 0, 1, 1], [], []>} : vector<8x32xf32>, vector<32x32xf32>, vector<8x32xf32> -> vector<8x32xf32>
      %c0_30 = arith.constant 0 : index
      %c0_31 = arith.constant 0 : index
      %40 = vector.load %arg8[%c0_30, %c0_31] : memref<1x32xf32, #tpu.memory_space<vmem>>, vector<1x32xf32>
      %41 = vector.broadcast %40 : vector<1x32xf32> to vector<8x32xf32>
      %42 = arith.addf %39, %41 : vector<8x32xf32>
      %c0_32 = arith.constant 0 : index
      %c0_33 = arith.constant 0 : index
      %43 = vector.load %arg11[%c0_32, %c0_33] : memref<8x32xf32, #tpu.memory_space<vmem>>, vector<8x32xf32>
      tpu.vector_store %arg11[%c0_32, %c0_33], %42 {strides = array<i32>} : memref<8x32xf32, #tpu.memory_space<vmem>>, vector<8x32xf32>,
    } else {
    }
    %c8_i32 = arith.constant 8 : i32
    %3 = arith.muli %arg1, %c8_i32 : i32
    %4 = tpu.assume_multiple %3, 8 : i32
    %c0 = arith.constant 0 : index
    %5 = arith.index_cast %4 : i32 to index
    %c0_1 = arith.constant 0 : index
    %6 = vector.load %arg2[%c0, %5, %c0_1] : memref<1x8x32xf32, #tpu.memory_space<vmem>>, vector<1x8x32xf32>
    %7 = vector.shape_cast %6 : vector<1x8x32xf32> to vector<8x32xf32>
    %c0_2 = arith.constant 0 : index
    %c0_3 = arith.constant 0 : index
    %8 = vector.load %arg3[%c0_2, %c0_3] : memref<32x32xf32, #tpu.memory_space<vmem>>, vector<32x32xf32>
    %cst = arith.constant dense<0.000000e+00> : vector<8x32xf32>
    %9 = tpu.matmul %7, %8, %cst {dimension_numbers = #tpu.dot_dimension_numbers<[1], [0], [0], [1], [0, 0, 1, 1], [], []>} : vector<8x32xf32>, vector<32x32xf32>, vector<8x32xf32> -> vector<8x32xf32>
    %c0_4 = arith.constant 0 : index
    %c0_5 = arith.constant 0 : index
    %10 = vector.load %arg4[%c0_4, %c0_5] : memref<1x32xf32, #tpu.memory_space<vmem>>, vector<1x32xf32>
    %11 = vector.broadcast %10 : vector<1x32xf32> to vector<8x32xf32>
    %12 = arith.addf %9, %11 : vector<8x32xf32>
    %c0_6 = arith.constant 0 : index
    %c0_7 = arith.constant 0 : index
    %13 = vector.load %arg10[%c0_6, %c0_7] : memref<8x32xf32, #tpu.memory_space<vmem>>, vector<8x32xf32>
    %cst_8 = arith.constant dense<0.000000e+00> : vector<8x8xf32>
    %14 = tpu.matmul %12, %13, %cst_8 {dimension_numbers = #tpu.dot_dimension_numbers<[1], [1], [0], [0], [0, 0, 1, 0], [], []>} : vector<8x32xf32>, vector<8x32xf32>, vector<8x8xf32> -> vector<8x8xf32>
    %cst_9 = arith.constant dense<0xFF800000> : vector<8xf32>
    %15 = vector.multi_reduction <maximumf>, %14, %cst_9 [1] : vector<8x8xf32> to vector<8xf32>
    %16 = vector.shape_cast %15 : vector<8xf32> to vector<8x1xf32>
    %17 = vector.broadcast %16 : vector<8x1xf32> to vector<8x8xf32>
    %18 = arith.subf %14, %17 : vector<8x8xf32>
    %19 = math.exp %18 : vector<8x8xf32>
    %cst_10 = arith.constant dense<0.000000e+00> : vector<8xf32>
    %20 = vector.multi_reduction <add>, %19, %cst_10 [1] : vector<8x8xf32> to vector<8xf32>
    %21 = vector.shape_cast %20 : vector<8xf32> to vector<8x1xf32>
    %c0_11 = arith.constant 0 : index
    %c0_12 = arith.constant 0 : index
    %22 = vector.load %arg11[%c0_11, %c0_12] : memref<8x32xf32, #tpu.memory_space<vmem>>, vector<8x32xf32>
    %cst_13 = arith.constant dense<0.000000e+00> : vector<8x32xf32>
    %23 = tpu.matmul %19, %22, %cst_13 {dimension_numbers = #tpu.dot_dimension_numbers<[1], [0], [0], [1], [0, 0, 1, 1], [], []>} : vector<8x8xf32>, vector<8x32xf32>, vector<8x32xf32> -> vector<8x32xf32>
    %24 = tpu.reciprocal %21 {approx = true} : vector<8x1xf32> -> vector<8x1xf32>
    %25 = vector.broadcast %24 : vector<8x1xf32> to vector<8x32xf32>
    %26 = arith.mulf %23, %25 : vector<8x32xf32>
    %c0_14 = arith.constant 0 : index
    %c0_15 = arith.constant 0 : index
    %c0_16 = arith.constant 0 : index
    %27 = vector.load %arg9[%c0_14, %c0_15, %c0_16] : memref<1x8x32xf32, #tpu.memory_space<vmem>>, vector<1x8x32xf32>
    %28 = vector.shape_cast %27 : vector<1x8x32xf32> to vector<8x32xf32>
    %29 = vector.shape_cast %26 : vector<8x32xf32> to vector<1x8x32xf32>
    tpu.vector_store %arg9[%c0_14, %c0_15, %c0_16], %29 {strides = array<i32>} : memref<1x8x32xf32, #tpu.memory_space<vmem>>, vector<1x8x32xf32>,
    return
  }
  func.func @transform_0(%arg0: i32, %arg1: i32) -> (i32, i32, i32) {
    %c0_i32 = arith.constant 0 : i32
    %c0_i32_0 = arith.constant 0 : i32
    %c0_i32_1 = arith.constant 0 : i32
    return %arg0, %c0_i32, %c0_i32_0 : i32, i32, i32
  }
  func.func @transform_1(%arg0: i32, %arg1: i32) -> (i32, i32) {
    %c0_i32 = arith.constant 0 : i32
    %c0_i32_0 = arith.constant 0 : i32
    %c0_i32_1 = arith.constant 0 : i32
    return %c0_i32, %c0_i32_0 : i32, i32
  }
  func.func @transform_2(%arg0: i32, %arg1: i32) -> (i32, i32) {
    %c0_i32 = arith.constant 0 : i32
    %c0_i32_0 = arith.constant 0 : i32
    %c0_i32_1 = arith.constant 0 : i32
    return %c0_i32, %c0_i32_0 : i32, i32
  }
  func.func @transform_3(%arg0: i32, %arg1: i32) -> (i32, i32) {
    %c0_i32 = arith.constant 0 : i32
    %c0_i32_0 = arith.constant 0 : i32
    %c0_i32_1 = arith.constant 0 : i32
    return %c0_i32, %c0_i32_0 : i32, i32
  }
  func.func @transform_4(%arg0: i32, %arg1: i32) -> (i32, i32) {
    %c0_i32 = arith.constant 0 : i32
    %c0_i32_0 = arith.constant 0 : i32
    %c0_i32_1 = arith.constant 0 : i32
    return %c0_i32, %c0_i32_0 : i32, i32
  }
  func.func @transform_5(%arg0: i32, %arg1: i32) -> (i32, i32) {
    %c0_i32 = arith.constant 0 : i32
    %c0_i32_0 = arith.constant 0 : i32
    %c0_i32_1 = arith.constant 0 : i32
    return %c0_i32, %c0_i32_0 : i32, i32
  }
  func.func @transform_6(%arg0: i32, %arg1: i32) -> (i32, i32) {
    %c0_i32 = arith.constant 0 : i32
    %c0_i32_0 = arith.constant 0 : i32
    %c0_i32_1 = arith.constant 0 : i32
    return %c0_i32, %c0_i32_0 : i32, i32
  }
  func.func @transform_7(%arg0: i32, %arg1: i32) -> (i32, i32, i32) {
    %c0_i32 = arith.constant 0 : i32
    %c0_i32_0 = arith.constant 0 : i32
    return %arg0, %arg1, %c0_i32 : i32, i32, i32
  }
}

</mosaic_0001>

<bundles_post_ra>
// kernel: tpu_custom_call.1
= control target key start
LH: loop header
LB: loop body
LE: loop exit
PB: predicated region body
PF: predicated region fallthrough
CT: control target
= control target key end

     0   :  { %s1678_s0 = inlined_call_operand.hbm [shape: f32[2,8,32], index: 0, kind: input, shape index: {}]   ;;  %s1679_s1 = inlined_call_operand.hbm [shape: f32[32,32], index: 1, kind: input, shape index: {}]   ;;  %s1680_s2 = inlined_call_operand.vmem [shape: f32[1,32], index: 2, kind: input, shape index: {}]   ;;  %s1681_s3 = inlined_call_operand.hbm [shape: f32[32,32], index: 3, kind: input, shape index: {}]   ;;  %s1682_s4 = inlined_call_operand.vmem [shape: f32[1,32], index: 4, kind: input, shape index: {}]   ;;  %s1683_s5 = inlined_call_operand.hbm [shape: f32[32,32], index: 5, kind: input, shape index: {}]   ;;  %s1684_s6 = inlined_call_operand.vmem [shape: f32[1,32], index: 6, kind: input, shape index: {}]   ;;  %s1685_s7 = inlined_call_operand.hbm [shape: f32[2,8,32], index: 7, kind: output, shape index: {}]  }
   0x1   :  { %1693 = sst [smem:[#allocation20_spill]] %s1685_s7 }
   0x2   :  { %12 = vsyncpa [#allocation5], 0 }
   0x3   :  { %14 = vsyncpa [#allocation5 + $0x1], 0 }
   0x4   :  { %15 = vsyncpa [#allocation8], 0 }
   0x5   :  { %16 = vsyncpa [#allocation11], 0 }
   0x6   :  { %17 = vsyncpa [#allocation6], 0 }
   0x7   :  { %19 = vsyncpa [#allocation6 + $0x1], 0  ;;  %s1368_s24 = smov 0   ;;  %s1370_s25 = smov 0  }
   0x8   :  { %s1372_s26 = smov 0   ;;  %s1374_s27 = smov 0  }
   0x9   :  { %s1376_s28 = smov 0   ;;  %s1378_s29 = smov 0  }
   0xa LB: > { %1694 = sst [smem:[#allocation17_spill]] %s1296_s24  ;;  %s902_s30 = sadd.s32 4294967295, %s1316_s29   ;;  %s1316_s29 = sphi %s1378_s29, %s25_s29   ;;  %s1312_s28 = sphi %s1376_s28, %s1720_s28   ;;  %s1308_s27 = sphi %s1374_s27, %s1719_s27   ;;  %s1304_s26 = sphi %s1372_s26, %s1718_s26   ;;  %s1300_s25 = sphi %s1370_s25, %s1717_s25   ;;  %s1296_s24 = sphi %s1368_s24, %s1716_s24  }
   0xb   : > { %1695 = sst [smem:[#allocation18_spill]] %s1308_s27  ;;  %s903_s8 = sadd.s32 4294967294, %s1316_s29  }
   0xc   : > { %p57_p0 = scmp.ne.s32.totalorder %s1300_s25, %s1296_s24  ;;  %p1402_p1 = scmp.eq.s32.totalorder %s902_s30, 0 }
   0xd   : > { %p1406_p2 = scmp.eq.s32.totalorder %s902_s30, 1  ;;  %p215_p3 = scmp.eq.s32.totalorder %s903_s8, 1 }
   0xe   : > { %s1696_s9 = scalar_select %p1402_p1, 1, 0 }
   0xf   : > { %s1697_s10 = scalar_select %p1406_p2, 1, 0 }
  0x10   : > { %p1412_p4 = por %p1402_p1, %p57_p0  ;;  %p904_p5 = scmp.ge.s32.totalorder %s1316_s29, 1 }
  0x11   : > { %p1417_p6 = por %p215_p3, %p57_p0  ;;  %p222_p7 = scmp.lt.s32.totalorder %s1316_s29, 3 }
  0x12   : > { %s1698_s11 = scalar_select %p1412_p4, 1, 0 }
  0x13   : > { %s1699_s12 = scalar_select %p1417_p6, 1, 0 }
  0x14   : > { %p1422_p8 = pnand %p904_p5, %p222_p7  ;;  %s1318_s14 = smov [#allocation7]  }
  0x15   : > { %1700 = sst [smem:[#allocation19_spill]] %s1699_s12  ;;  %s234_s15 = sshll.u32 %s1318_s14, 4  ;;  %s1426_s15 = int_to_ptr.vmem [resolvable:$true] %s234_s15 }
  0x16   : > { %s1701_s13 = scalar_select %p1422_p8, 1, 0 }
  0x17   : > { %p1026_p9 = pneg %p1422_p8  ;;  %s1319_s17 = smov [#allocation9]  }
  0x18   : > { %s250_s18 = sshll.u32 %s1319_s17, 4  ;;  %s1320_s19 = smov [#allocation10]   ;;  %s1437_s18 = int_to_ptr.vmem [resolvable:$true] %s250_s18 }
  0x19   : > { %p1433_p11 = pnand %p1026_p9, %p1402_p1  ;;  %s1439_s20 = sshll.u32 %s1320_s19, 4  ;;  %s267_s20 = int_to_ptr.vmem [resolvable:$true] %s1439_s20 }
  0x1a   : > { %s1112_s23 = scalar_lea.hbm %s1679_s1, 512 }
  0x1b   : > { %p1113_p12 = scmp.ne.s32.totalorder %s1679_s1, %s1112_s23  ;;  %p1449_p13 = pneg %p1433_p11 }
  0x1c   : > { %p1119_p5 = scmp.lt.u32.totalorder %s1112_s23, %s1679_s1 }
  0x1d   : > { %p1115_p0 = pnand %p1449_p13, %p1113_p12 }
  0x1f   : > { %p1116_p3 = pneg %p1115_p0 }
  0x21   : > { %p1121_p7 = pnand %p1119_p5, %p1116_p3 }
  0x23   : > { %1124 = shalt.err (!%p1121_p7)
}
  0x24   : > { %s1125_s21 = scalar_lea.vmem %s1426_s15, 512  ;;  %p1133_p1 = scmp.lt.s32.totalorder %s1426_s15, %s1426_s15 }
  0x25   : > { %p1126_p9 = scmp.ne.s32.totalorder %s1426_s15, %s1125_s21  ;;  %p1134_p4 = scmp.lt.s32.totalorder %s1125_s21, %s1125_s21 }
  0x27   : > { %p1128_p10 = pnand %p1126_p9, %p1449_p13  ;;  %p1135_p12 = por %p1134_p4, %p1133_p1 }
  0x29   : > { %p1129_p6 = pneg %p1128_p10 }
  0x2b   : > { %p1136_p0 = pnand %p1135_p12, %p1129_p6 }
  0x2d   : > { %1139 = shalt.err (!%p1136_p0)
}
  0x2e   : > { %s1321_s22 = smov 128   ;;  %s1322_s23 = smov 8  }
  0x2f   : > { %1029 = dma.hbm_to_vmem [thread:$0]  (!%p1433_p11), %s1679_s1, 512, %s1426_s15, [#allocation8], %s1321_s22, %s1321_s22, %s1322_s23  }
  0x30   : > { %s1140_s21 = scalar_lea.hbm %s1681_s3, 512 }
  0x31   : > { %p1141_p1 = scmp.ne.s32.totalorder %s1681_s3, %s1140_s21  ;;  %p1147_p10 = scmp.lt.u32.totalorder %s1140_s21, %s1681_s3 }
  0x33   : > { %p1143_p4 = pnand %p1141_p1, %p1449_p13 }
  0x35   : > { %p1144_p6 = pneg %p1143_p4 }
  0x37   : > { %p1149_p3 = pnand %p1147_p10, %p1144_p6 }
  0x39   : > { %1152 = shalt.err (!%p1149_p3)
}
  0x3a   : > { %s1153_s15 = scalar_lea.vmem %s1437_s18, 512  ;;  %p1161_p12 = scmp.lt.s32.totalorder %s1437_s18, %s1437_s18 }
  0x3b   : > { %p1154_p5 = scmp.ne.s32.totalorder %s1437_s18, %s1153_s15  ;;  %p1162_p0 = scmp.lt.s32.totalorder %s1153_s15, %s1153_s15 }
  0x3d   : > { %p1156_p7 = pnand %p1154_p5, %p1449_p13  ;;  %p1163_p1 = por %p1162_p0, %p1161_p12 }
  0x3f   : > { %p1157_p9 = pneg %p1156_p7 }
  0x41   : > { %p1164_p4 = pnand %p1163_p1, %p1157_p9 }
  0x43   : > { %1167 = shalt.err (!%p1164_p4)
}
  0x44   : > { %1032 = dma.hbm_to_vmem [thread:$0]  (!%p1433_p11), %s1681_s3, 512, %s1437_s18, [#allocation8], %s1321_s22, %s1321_s22, %s1322_s23  }
  0x45   : > { %s1168_s30 = scalar_lea.hbm %s1683_s5, 512 }
  0x46   : > { %p1169_p6 = scmp.ne.s32.totalorder %s1683_s5, %s1168_s30  ;;  %p1175_p5 = scmp.lt.u32.totalorder %s1168_s30, %s1683_s5 }
  0x48   : > { %p1171_p10 = pnand %p1169_p6, %p1449_p13 }
  0x4a   : > { %p1172_p3 = pneg %p1171_p10 }
  0x4c   : > { %p1177_p7 = pnand %p1175_p5, %p1172_p3 }
  0x4e   : > { %1180 = shalt.err (!%p1177_p7)
}
  0x4f   : > { %s1181_s15 = scalar_lea.vmem %s267_s20, 512  ;;  %p1189_p1 = scmp.lt.s32.totalorder %s267_s20, %s267_s20 }
  0x50   : > { %p1182_p9 = scmp.ne.s32.totalorder %s267_s20, %s1181_s15  ;;  %p1190_p4 = scmp.lt.s32.totalorder %s1181_s15, %s1181_s15 }
  0x52   : > { %p1184_p12 = pnand %p1182_p9, %p1449_p13  ;;  %p1191_p8 = por %p1190_p4, %p1189_p1 }
  0x54   : > { %p1185_p0 = pneg %p1184_p12 }
  0x56   : > { %p1192_p2 = pnand %p1191_p8, %p1185_p0 }
  0x58   : > { %1195 = shalt.err (!%p1192_p2)
}
  0x59   : > { %1035 = dma.hbm_to_vmem [thread:$0]  (!%p1433_p11), %s1683_s5, 512, %s267_s20, [#allocation11], %s1321_s22, %s1321_s22, %s1322_s23  }
  0x5a   : > { %s44_s14 = sadd.s32 1, %s1304_s26  ;;  %s37_s16 = sadd.s32 1, %s1312_s28 }
  0x5b   : > { %p51_p2 = scmp.ne.s32.totalorder %s1304_s26, %s1300_s25  ;;  %p39_p8 = scmp.ge.s32.totalorder %s37_s16, 2 }
  0x5c   : > { %p52_p13 = scmp.eq.s32.totalorder %s1316_s29, 0  ;;  %p1704_p6 = scmp.ne.s32.totalorder %s1697_s10, 0 }
  0x5d   : > { %p1047_p3 = scmp.lt.s32.totalorder %s1316_s29, 2  ;;  %s1722_s16 = smov (%p39_p8, %s37_s16), 0 }
  0x5e   : > { %p1528_p10 = por %p1704_p6, %p51_p2  ;;  %p53_p5 = por %p52_p13, %p51_p2 }
  0x5f   : > { %s283_s27 = sand.u32 1, %s1304_s26   ;;  %s41_s12 = ssub.s32 %s1312_s28, %s1722_s16 }
  0x60   : > { %p42_p7 = scmp.eq.s32.totalorder %s41_s12, 0  ;;  %s909_s20 = sshll.u32 %s283_s27, 3 }
  0x61   : > { %s910_s22 = sshll.u32 %s1312_s28, 7  ;;  %s287_s17 = scalar_lea.vmem [#allocation4], %s909_s20 }
  0x62   : > { %s1540_s23 = scalar_select %p42_p7, %s1304_s26, %s44_s14  }
  0x63   : > { %s1545_s10 = scalar_lea.hbm %s1678_s0, %s910_s22  ;;  %s294_s19 = sshll.u32 %s287_s17, 4  ;;  %s1547_s19 = int_to_ptr.vmem [resolvable:$true] %s294_s19 }
  0x64   : > { %p1551_p11 = pnand %p1047_p3, %p53_p5  ;;  %s284_s15 = scalar_lea.sflag [#allocation5], %s283_s27 }
  0x65   : > { %s1196_s18 = scalar_lea.hbm %s1545_s10, 128  ;;  %s1201_s12 = scalar_lea.hbm %s1678_s0, 256 }
  0x66   : > { %p1197_p9 = scmp.ne.s32.totalorder %s1545_s10, %s1196_s18  ;;  %p1198_p12 = pneg %p1551_p11 }
  0x67   : > { %p1202_p4 = scmp.lt.u32.totalorder %s1545_s10, %s1678_s0  ;;  %p1203_p2 = scmp.lt.u32.totalorder %s1201_s12, %s1196_s18 }
  0x68   : > { %p1199_p0 = pnand %p1198_p12, %p1197_p9  ;;  %p1205_p13 = scmp.lt.u32.totalorder %s1196_s18, %s1545_s10 }
  0x69   : > { %p1204_p8 = por %p1203_p2, %p1202_p4 }
  0x6a   : > { %p1200_p1 = pneg %p1199_p0 }
  0x6b   : > { %p1206_p6 = por %p1205_p13, %p1204_p8 }
  0x6d   : > { %p1207_p3 = pnand %p1206_p6, %p1200_p1 }
  0x6f   : > { %1210 = shalt.err (!%p1207_p3)
}
  0x70   : > { %s1211_s27 = scalar_lea.vmem %s1547_s19, 128  ;;  %s1323_s30 = smov [#allocation4]  }
  0x71   : > { %p1212_p5 = scmp.ne.s32.totalorder %s1547_s19, %s1211_s27  ;;  %s1216_s8 = sshll.u32 %s1323_s30, 4  ;;  %s1217_s8 = int_to_ptr.vmem [resolvable:$false] %s1216_s8 }
  0x72   : > { %s1218_s17 = scalar_lea.vmem %s1217_s8, 256  ;;  %p1219_p0 = scmp.lt.s32.totalorder %s1547_s19, %s1217_s8 }
  0x73   : > { %p1214_p7 = pnand %p1212_p5, %p1198_p12  ;;  %p1220_p4 = scmp.lt.s32.totalorder %s1218_s17, %s1211_s27 }
  0x75   : > { %p1215_p9 = pneg %p1214_p7  ;;  %p1221_p2 = por %p1220_p4, %p1219_p0 }
  0x77   : > { %p1222_p8 = pnand %p1221_p2, %p1215_p9 }
  0x79   : > { %1225 = shalt.err (!%p1222_p8)
}
  0x7a   : > { %1039 = dma.hbm_to_vmem [thread:$0]  (!%p1551_p11), %s1545_s10, 128, %s1547_s19, %s284_s15  }
  0x7b   : > { %p1707_p1 = scmp.ne.s32.totalorder %s1701_s13, 0 }
  0x7c   : > { %s1583_s18 = sand.u32 (!%p1707_p1), 1, %s1300_s25   ;;  %p1708_p12 = scmp.ne.s32.totalorder (!%p1707_p1), %s1698_s11, 0 }
  0x7d   : > { %303 = sbr.rel (%p1707_p1) target bundleno = 972 (0x3cc), region = 48  ;;  %s912_s7 = sshll.u32 (!%p1707_p1), %s1583_s18, 3 }
  0x7e   : > { %s306_s14 = scalar_lea.sflag (!%p1707_p1), [#allocation5], %s1583_s18  ;;  %s309_s12 = scalar_lea.vmem (!%p1707_p1), [#allocation4], %s912_s7 }
  0x84   : > { %1279 = dma.done.wait (%p1708_p12), %s306_s14, 128  }
  0x85   : > { %1281 = vsyncadd (%p1708_p12), %s306_s14, 4294967168  ;;  %p1709_p11 = scmp.ne.s32.totalorder %s1696_s9, 0 }
  0x87   : > { %1283 = dma.done.wait (%p1709_p11), [#allocation8], 1024  }
  0x88   : > { %1285 = vsyncadd (%p1709_p11), [#allocation8], 4294966272 }
  0x89   : > { %1287 = dma.done.wait (%p1709_p11), [#allocation11], 512  }
  0x8a   : > { %1289 = vsyncadd (%p1709_p11), [#allocation11], 4294966784  ;;  %v1324_v0 = vmov 0.0|0.0   ;;  %vm1325_vm0 = vmmov 0   ;;  %v1326_v1 = vmov 0.0   ;;  %v357_v2 = vld [vmem:[#allocation9] sm:$0xff] }
  0x8b   : > { %992 = vmatprep.subr.bf16.mxu0 %v1324_v0  ;;  %957 = vmatprep.mubr.msk.f32.mxu0 %vm1325_vm0, %v1326_v1  ;;  %v358_v3 = vld [vmem:[#allocation9 + $0x8] sm:$0xff]  ;;  %v359_v4 = vld [vmem:[#allocation9 + $0x10] sm:$0xff]  ;;  %v360_v6 = vld [vmem:[#allocation9 + $0x18] sm:$0xff]  ;;  %vm368_vm1 = vcmask 261120   ;;  %s1710_s15 = sld [smem:[#allocation18_spill]]  ;;  %vm690_vm2 = vcmask 64512  }
  0x8c   : > { %998 = vmatprep.subr.bf16.mxu1 %v1324_v0  ;;  %968 = vmatprep.mubr.msk.f32.mxu1 %vm1325_vm0, %v1326_v1  ;;  %v993_v5 = vpack.c.bf16 %v358_v3, %v357_v2  ;;  %v996_v7 = vpack.c.bf16 %v360_v6, %v359_v4  ;;  %v443_v8 = vld [vmem:[#allocation10] sm:$0xff]  ;;  %v444_v9 = vld [vmem:[#allocation10 + $0x8] sm:$0xff]  ;;  %v356_v13 = vld [vmem:[%s309_s12] sm:$0xff]  ;;  %s351_s22 = scalar_lea.vmem [#allocation12], %s912_s7  ;;  %s1711_s17 = sld [smem:[#allocation20_spill]] }
  0x8d   : > { %v528_v10 = vld [vmem:[#allocation7] sm:$0xff]  ;;  %v529_v11 = vld [vmem:[#allocation7 + $0x8] sm:$0xff]  ;;  %v999_v12 = vpack.c.bf16 %v444_v9, %v443_v8  ;;  %v530_v15 = vld [vmem:[#allocation7 + $0x10] sm:$0xff]  ;;  %s792_s27 = sshll.u32 %s351_s22, 4  ;;  %s778_s12 = scalar_lea.sflag [#allocation6], %s1583_s18  ;;  %s1630_s27 = int_to_ptr.vmem [resolvable:$true] %s792_s27 }
  0x8e   : > { %994 = vmatpush3.bf16.msra.mxu0 %v993_v5  ;;  %v1005_v14 = vpack.c.bf16 %v529_v11, %v528_v10  ;;  %v531_v16 = vld [vmem:[#allocation7 + $0x18] sm:$0xff]  ;;  %v445_v18 = vld [vmem:[#allocation10 + $0x10] sm:$0xff]  ;;  %v917_v21 = vld [vmem:[%s1682_s4] ss:$0 sm:$0xff]  ;;  %s1226_s9 = scalar_lea.vmem %s1630_s27, 128  ;;  %s1327_s7 = smov [#allocation12]  }
  0x8f   : > { %995 = vmatprep.subr.bf16.mxu0 %v1324_v0  ;;  %1000 = vmatpush3.bf16.msra.mxu1 %v999_v12  ;;  %v1008_v17 = vpack.c.bf16 %v531_v16, %v530_v15  ;;  %v446_v19 = vld [vmem:[#allocation10 + $0x18] sm:$0xff]  ;;  %v921_v25 = vld [vmem:[%s1680_s2] ss:$0 sm:$0xff]  ;;  %p1227_p13 = scmp.ne.s32.totalorder %s1630_s27, %s1226_s9  ;;  %s1230_s11 = sshll.u32 %s1327_s7, 4  ;;  %s1231_s11 = int_to_ptr.vmem [resolvable:$false] %s1230_s11 }
  0x90   : > { %1001 = vmatprep.subr.bf16.mxu1 %v1324_v0  ;;  %v1002_v20 = vpack.c.bf16 %v446_v19, %v445_v18  ;;  %v919_v30 = vld [vmem:[%s1684_s6] ss:$0 sm:$0xff]  ;;  %s1232_s13 = scalar_lea.vmem %s1231_s11, 256  ;;  %p1233_p5 = scmp.lt.s32.totalorder %s1630_s27, %s1231_s11 }
  0x91   : > { %s927_s20 = sshll.u32 %s1710_s15, 7  ;;  %p1228_p6 = pnand %p1227_p13, %p1528_p10 }
  0x92   : > { %997 = vmatpush3.bf16.msra.mxu0 %v996_v7  ;;  %s1628_s14 = scalar_lea.hbm %s1711_s17, %s927_s20  ;;  %p1234_p7 = scmp.lt.s32.totalorder %s1232_s13, %s1226_s9 }
  0x93   : > { %1004 = vmatprep.subr.bf16.mxu0 %v1324_v0  ;;  %1003 = vmatpush3.bf16.msra.mxu1 %v1002_v20  ;;  %p1229_p3 = pneg %p1228_p6 }
  0x94   : > { %982 = vmatprep.subr.mxu1 %v1326_v1  ;;  %p1235_p9 = por %p1234_p7, %p1233_p5 }
  0x95   : > { %958 = vmatmul.mubr.msk.f32.vlgmr.msra.gmra.mrb[0].mxu0 %vm368_vm1, %v356_v13 }
  0x96   : > { %1006 = vmatpush3.bf16.msra.mxu0 %v1005_v14  ;;  %979 = vmatprep.mubr.msk.f32.mxu0 %vm1325_vm0, %v1326_v1  ;;  %p1236_p0 = pnand %p1235_p9, %p1229_p3 }
  0x97   : > { %1007 = vmatprep.subr.bf16.mxu0 %v1324_v0  ;;  %969 = vmatmul.mubr.msk.f32.vlgmr.msra.gmra.mrb[0].mxu1 %vm368_vm1, %v356_v13 }
  0x98   : > { %984 = vmatprep.mubr.msk.f32.mxu1 %vm1325_vm0, %v1326_v1 }
  0x9a   : > { %1009 = vmatpush3.bf16.msra.mxu0 %v1008_v17 }
  0x9d   : > { %980 = vmatmul.mubr.msk.f32.vlgmr.msra.gmra.mrb[2].mxu0 %vm368_vm1, %v356_v13 }
 0x168   : > { %v438_v22 = vpop.f32.mrb[0].mxu0 }
 0x169   : > { %v439_v23 = vadd.f32 %v917_v21, %v438_v22  ;;  %v959_v24 = vpop.f32.mrb[1].mxu0 }
 0x16a   : > { %v520_v31 = vpop.f32.mrb[0].mxu1 }
 0x16b   : > { %442 = vst.msk [vmem:[#allocation2] sm:$0xff] %vm368_vm1, %v439_v23  ;;  %v521_v32 = vadd.f32 %v919_v30, %v520_v31  ;;  %v970_v33 = vpop.f32.mrb[1].mxu1 }
 0x16d   : > { %524 = vst.msk [vmem:[#allocation3] sm:$0xff] %vm368_vm1, %v521_v32 }
 0x170   : > { %v609_v26 = vpop.f32.mrb[2].mxu0 }
 0x171   : > { %v981_v27 = vpop.f32.mrb[3].mxu0  ;;  %v610_v28 = vadd.f32 %v921_v25, %v609_v26 }
 0x172   : > { %v613_v29 = vld [vmem:[#allocation2] sm:$0xff] }
 0x173   : > { %983 = vmatpush3.xpose.msk.msra.mxu1 %vm368_vm1, %v613_v29 }
 0x174   : > { %987 = vmatprep.subr.mxu1 %v1326_v1  ;;  %v700_v34 = vld [vmem:[#allocation3] sm:$0xff] }
 0x176   : > { %985 = vmatmul.mubr.msk.f32.vlgmr.msra.gmra.mrb[2].mxu1 %vm368_vm1, %v610_v28 }
 0x177   : > { %989 = vmatprep.mubr.msk.f32.mxu1 %vm1325_vm0, %v1326_v1  ;;  %988 = vmatpush3.msra.mxu1 %v700_v34 }
 0x249   : > { %v686_v35 = vpop.f32.mrb[2].mxu1 }
 0x24a   : > { %v986_v36 = vpop.f32.mrb[3].mxu1  ;;  %v691_v37 = vsel %vm690_vm2, %v686_v35, -inf }
 0x24b   : > { %692 = vmax.xlane.f32.xlu0 %v691_v37 }
 0x2d8   : > { %v693_v38 = vpop.xlane.xlu0 %692 }
 0x2d9   : > { %v694_v39 = vsub.f32 %v686_v35, %v693_v38 }
 0x2db   : > { %v695_v40 = vmul.f32 1.442695, %v694_v39 }
 0x2dd   : > { %1108 = vpow2.f32 %v695_v40 }
 0x2e7   : > { %v1109_v41 = vpop.eup %1108 }
 0x2e8   : > { %990 = vmatmul.mubr.msk.f32.vlgmr.msra.gmra.mrb[4].mxu1 %vm690_vm2, %v1109_v41  ;;  %v697_v42 = vsel %vm690_vm2, %v1109_v41, 0.0 }
 0x2e9   : > { %698 = vadd.xlane.f32.xlu0 %v697_v42 }
 0x376   : > { %v699_v43 = vpop.xlane.xlu0 %698 }
 0x377   : > { %1110 = vrcp.f32 %v699_v43 }
 0x381   : > { %v1111_v44 = vpop.eup %1110 }
 0x3bb   : > { %v770_v45 = vpop.f32.mrb[4].mxu1 }
 0x3bc   : > { %v775_v46 = vmul.f32 %v1111_v44, %v770_v45  ;;  %v991_v47 = vpop.f32.mrb[5].mxu1 }
 0x3be   : > { %776 = vst.msk [vmem:[%s351_s22] sm:$0xff] %vm368_vm1, %v775_v46 }
 0x3bf   : > { %1239 = shalt.err (!%p1236_p0)
}
 0x3c0   : > { %s1240_s18 = scalar_lea.hbm %s1628_s14, 128  ;;  %s1244_s21 = scalar_lea.hbm %s1711_s17, 256 }
 0x3c1   : > { %p1241_p4 = scmp.ne.s32.totalorder %s1628_s14, %s1240_s18  ;;  %p1245_p1 = scmp.lt.u32.totalorder %s1628_s14, %s1711_s17 }
 0x3c2   : > { %p1246_p12 = scmp.lt.u32.totalorder %s1244_s21, %s1240_s18  ;;  %p1248_p13 = scmp.lt.u32.totalorder %s1240_s18, %s1628_s14 }
 0x3c3   : > { %p1242_p2 = pnand %p1241_p4, %p1528_p10 }
 0x3c4   : > { %p1247_p11 = por %p1246_p12, %p1245_p1 }
 0x3c5   : > { %p1243_p8 = pneg %p1242_p2 }
 0x3c6   : > { %p1249_p6 = por %p1248_p13, %p1247_p11 }
 0x3c8   : > { %p1250_p3 = pnand %p1249_p6, %p1243_p8 }
 0x3ca   : > { %1253 = shalt.err (!%p1250_p3)
}
 0x3cb   : > { %1024 = dma.vmem_to_hbm [thread:$0]  (%p1528_p10), %s1630_s27, 128, %s1628_s14, %s778_s12  }
 0x3cc PF: > { %s1712_s22 = sld [smem:[#allocation17_spill]]  ;;  %s1713_s30 = sld [smem:[#allocation19_spill]] }
 0x3cd   : > { %p1715_p7 = scmp.ge.s32.totalorder %s1316_s29, 2 }
 0x3d2   : > { %s804_s8 = sand.u32 1, %s1712_s22   ;;  %p1714_p5 = scmp.ne.s32.totalorder %s1713_s30, 0 }
 0x3d3   : > { %s805_s9 = scalar_lea.sflag [#allocation6], %s804_s8 }
 0x3d4   : > { %p1041_p9 = pnand %p1715_p7, %p1714_p5 }
 0x3d6   : > { %1291 = dma.done.wait (!%p1041_p9), %s805_s9, 128  }
 0x3d7   : > { %1293 = vsyncadd (!%p1041_p9), %s805_s9, 4294967168  ;;  %s25_s29 = sadd.s32 1, %s1316_s29   ;;  %s1716_s24 = smov %s1300_s25 }
 0x3d8   : > { %p22_p0 = scmp.ge.s32.totalorder %s25_s29, 4   ;;  %s1717_s25 = smov %s1304_s26 }
 0x3d9   : > { %s1718_s26 = smov %s1540_s23  ;;  %s1719_s27 = smov %s1312_s28 }
 0x3da   : > { %s1720_s28 = smov %s1722_s16  ;;  %24 = sbr.rel (!%p22_p0) target bundleno = 10 (0xa), region = 110 }
 0x3e1   :  { %810 = vsyncpa [#allocation5], 1 }
 0x3e2   :  { %812 = vsyncpa [#allocation5 + $0x1], 1 }
 0x3e3   :  { %813 = vsyncpa [#allocation8], 1 }
 0x3e4   :  { %814 = vsyncpa [#allocation11], 1 }
 0x3e5   :  { %815 = vsyncpa [#allocation6], 1 }
 0x3e6   :  { %817 = vsyncpa [#allocation6 + $0x1], 1 }

</bundles_post_ra>
